<compile_context>
chip_gen: v7x
topology: tpu7x:2x2x1
jax: 0.10.0
libtpu: 0.0.40
codegen_flags: <defaults>
</compile_context>

<pallas_src>
import math

import jax
import jax.numpy as jnp
from jax.experimental import pallas as pl
from jax.experimental.pallas import tpu as pltpu

_INV_SQRT2 = 1.0 / math.sqrt(2.0)


def _gelu_exact_f32(h):
    # Exact (erf) GELU == PyTorch nn.GELU default.  h is f32.
    return 0.5 * h * (1.0 + jax.lax.erf(h * _INV_SQRT2))


def mlp_kernel_fused(x_ref, w1_ref, b1_ref, w2_ref, b2_ref, o_ref):
    # x_ref:  (tm, H), w1_ref: (H, F), b1_ref: (1, F), w2_ref: (F, H),
    # b2_ref: (1, H), o_ref: (tm, H).  Whole FFN dim in one shot.
    h = jnp.dot(x_ref[...], w1_ref[...], preferred_element_type=jnp.float32)
    h = _gelu_exact_f32(h + b1_ref[...])
    out = jnp.dot(h.astype(w2_ref.dtype), w2_ref[...],
                  preferred_element_type=jnp.float32)
    o_ref[...] = (out + b2_ref[...]).astype(o_ref.dtype)


def mlp_kernel_tiled(x_ref, w1_ref, b1_ref, w2_ref, b2_ref, o_ref, acc_ref):
    # x_ref:  (tm, H)   token tile
    # w1_ref: (H, tf)   slab of W1^T along the FFN dim
    # b1_ref: (1, tf)
    # w2_ref: (tf, H)   matching slab of W2^T
    # b2_ref: (1, H)
    # acc_ref:(tm, H)   f32 accumulator, resident across the F grid axis
    f = pl.program_id(1)

    @pl.when(f == 0)
    def _():
        acc_ref[...] = jnp.zeros_like(acc_ref)

    h = jnp.dot(x_ref[...], w1_ref[...], preferred_element_type=jnp.float32)
    h = _gelu_exact_f32(h + b1_ref[...])
    # Cast the intermediate back to the weight dtype so bf16 weights keep the
    # bf16 MXU path (no-op for f32).
    acc_ref[...] += jnp.dot(h.astype(w2_ref.dtype), w2_ref[...],
                            preferred_element_type=jnp.float32)

    @pl.when(f == pl.num_programs(1) - 1)
    def _():
        o_ref[...] = (acc_ref[...] + b2_ref[...]).astype(o_ref.dtype)


def mlp_pallas(x, w1_t, b1, w2_t, b2, *, tm=256, tf=1024,
               vmem_limit_bytes=64 * 1024 * 1024):
    """x: (B, S, H).  w1_t: (H, F), b1: (F,), w2_t: (F, H), b2: (H,)."""
    B, S, H = x.shape
    H_in, F = w1_t.shape
    assert H_in == H and w2_t.shape == (F, H) and b1.shape == (F,) and b2.shape == (H,)
    M = B * S

    # Token tile: as large as requested, clamped to the problem, sublane-aligned.
    tm = max(8, min(tm, M))
    tm = max(8, (tm // 8) * 8)
    Mp = pl.cdiv(M, tm) * tm

    # FFN tile: full F if it fits in one slab, else a 128-aligned slab (pad F).
    if F <= tf:
        tf = F
        Fp = F
    else:
        tf = max(128, (tf // 128) * 128)
        Fp = pl.cdiv(F, tf) * tf

    x2d = x.reshape(M, H)
    if Mp != M:
        x2d = jnp.pad(x2d, ((0, Mp - M), (0, 0)))
    if Fp != F:
        # Zero-padded FFN columns/rows contribute exactly zero to the output.
        w1_t = jnp.pad(w1_t, ((0, 0), (0, Fp - F)))
        b1 = jnp.pad(b1, (0, Fp - F))
        w2_t = jnp.pad(w2_t, ((0, Fp - F), (0, 0)))

    b1_2d = b1.reshape(1, Fp)
    b2_2d = b2.reshape(1, H)

    compiler_params = pltpu.CompilerParams(
        dimension_semantics=("parallel",) if Fp == tf else ("parallel", "arbitrary"),
        vmem_limit_bytes=vmem_limit_bytes,
    )

    if Fp == tf:
        # Single F slab: weights stay resident across the whole grid (constant
        # block index -> no re-DMA), no scratch accumulator pass.
        out2d = pl.pallas_call(
            mlp_kernel_fused,
            out_shape=jax.ShapeDtypeStruct((Mp, H), x.dtype),
            grid_spec=pltpu.PrefetchScalarGridSpec(
                num_scalar_prefetch=0,
                grid=(Mp // tm,),
                in_specs=[
                    pl.BlockSpec((tm, H), lambda i: (i, 0)),   # x tile
                    pl.BlockSpec((H, Fp), lambda i: (0, 0)),   # W1^T (resident)
                    pl.BlockSpec((1, Fp), lambda i: (0, 0)),   # b1 (resident)
                    pl.BlockSpec((Fp, H), lambda i: (0, 0)),   # W2^T (resident)
                    pl.BlockSpec((1, H), lambda i: (0, 0)),    # b2 (resident)
                ],
                out_specs=pl.BlockSpec((tm, H), lambda i: (i, 0)),
            ),
            compiler_params=compiler_params,
        )(x2d, w1_t, b1_2d, w2_t, b2_2d)
    else:
        out2d = pl.pallas_call(
            mlp_kernel_tiled,
            out_shape=jax.ShapeDtypeStruct((Mp, H), x.dtype),
            grid_spec=pltpu.PrefetchScalarGridSpec(
                num_scalar_prefetch=0,
                grid=(Mp // tm, Fp // tf),
                in_specs=[
                    pl.BlockSpec((tm, H), lambda i, f: (i, 0)),   # x tile
                    pl.BlockSpec((H, tf), lambda i, f: (0, f)),   # W1^T slab
                    pl.BlockSpec((1, tf), lambda i, f: (0, f)),   # b1 slab
                    pl.BlockSpec((tf, H), lambda i, f: (f, 0)),   # W2^T slab
                    pl.BlockSpec((1, H), lambda i, f: (0, 0)),    # b2 (resident)
                ],
                out_specs=pl.BlockSpec((tm, H), lambda i, f: (i, 0)),
                scratch_shapes=[pltpu.VMEM((tm, H), jnp.float32)],
            ),
            compiler_params=compiler_params,
        )(x2d, w1_t, b1_2d, w2_t, b2_2d)

    return out2d[:M].reshape(B, S, H)


def init_params(key, hidden_dim, mlp_hidden, dtype=jnp.float32):
    """Deterministic init mimicking nn.Linear default (uniform +/- 1/sqrt(fan_in))."""
    k1, k2, k3, k4 = jax.random.split(key, 4)
    bound1 = 1.0 / math.sqrt(hidden_dim)
    bound2 = 1.0 / math.sqrt(mlp_hidden)
    # Stored pre-transposed: (in, out)
    w1_t = jax.random.uniform(k1, (hidden_dim, mlp_hidden), dtype,
                              minval=-bound1, maxval=bound1)
    b1 = jax.random.uniform(k2, (mlp_hidden,), dtype, minval=-bound1, maxval=bound1)
    w2_t = jax.random.uniform(k3, (mlp_hidden, hidden_dim), dtype,
                              minval=-bound2, maxval=bound2)
    b2 = jax.random.uniform(k4, (hidden_dim,), dtype, minval=-bound2, maxval=bound2)
    return w1_t, b1, w2_t, b2


def mlp_reference(x, w1_t, b1, w2_t, b2):
    h = x @ w1_t + b1
    h = 0.5 * h * (1.0 + jax.lax.erf(h * jnp.asarray(_INV_SQRT2, h.dtype)))
    return h @ w2_t + b2


if __name__ == "__main__":
    # Test 1: shapes implied by the module (single F slab -> fused path).
    batch, seq, hidden_dim, mlp_hidden = 2, 8, 32, 128
    key = jax.random.PRNGKey(0)
    kx, kp = jax.random.split(key)
    x = jax.random.normal(kx, (batch, seq, hidden_dim), dtype=jnp.float32)
    w1_t, b1, w2_t, b2 = init_params(kp, hidden_dim, mlp_hidden)

    out = jax.block_until_ready(mlp_pallas(x, w1_t, b1, w2_t, b2))
    ref = mlp_reference(x, w1_t, b1, w2_t, b2)
    assert out.shape == (batch, seq, hidden_dim)
    assert jnp.allclose(out, ref, atol=1e-4, rtol=1e-4), "mismatch vs reference (test 1)"

    # Test 2: exercises the F-tiled accumulator path and token padding.
    batch2, seq2, hidden2, mlp2 = 3, 5, 128, 384
    kx2, kp2 = jax.random.split(jax.random.PRNGKey(1))
    x2 = jax.random.normal(kx2, (batch2, seq2, hidden2), dtype=jnp.float32)
    p2 = init_params(kp2, hidden2, mlp2)
    out2 = jax.block_until_ready(mlp_pallas(x2, *p2, tf=128))
    ref2 = mlp_reference(x2, *p2)
    assert out2.shape == (batch2, seq2, hidden2)
    assert jnp.allclose(out2, ref2, atol=1e-4, rtol=1e-4), "mismatch vs reference (test 2)"

    print("KERNEL_OK")
</pallas_src>

<mosaic_0001>
module attributes {stable_mosaic.version = 11 : i64} {
  func.func @mlp_kernel_fused(%arg0: i32, %arg1: memref<16x32xf32, #tpu.memory_space<vmem>>, %arg2: memref<32x128xf32, #tpu.memory_space<vmem>>, %arg3: memref<1x128xf32, #tpu.memory_space<vmem>>, %arg4: memref<128x32xf32, #tpu.memory_space<vmem>>, %arg5: memref<1x32xf32, #tpu.memory_space<vmem>>, %arg6: memref<16x32xf32, #tpu.memory_space<vmem>>) attributes {dimension_semantics = [#tpu.dimension_semantics<parallel>], iteration_bounds = array<i64: 1>, scalar_prefetch = 0 : i64, scratch_operands = 0 : i64, tpu.core_type = #tpu.core_type<tc>, window_params = [{transform_indices = @transform_0, window_bounds = array<i64: 16, 32>}, {pipeline_mode = #tpu.pipeline_mode<synchronous>, transform_indices = @transform_1, window_bounds = array<i64: 32, 128>}, {pipeline_mode = #tpu.pipeline_mode<synchronous>, transform_indices = @transform_2, window_bounds = array<i64: 1, 128>}, {pipeline_mode = #tpu.pipeline_mode<synchronous>, transform_indices = @transform_3, window_bounds = array<i64: 128, 32>}, {pipeline_mode = #tpu.pipeline_mode<synchronous>, transform_indices = @transform_4, window_bounds = array<i64: 1, 32>}, {transform_indices = @transform_5, window_bounds = array<i64: 16, 32>}]} {
    %c0 = arith.constant 0 : index
    %c0_0 = arith.constant 0 : index
    %0 = vector.load %arg1[%c0, %c0_0] : memref<16x32xf32, #tpu.memory_space<vmem>>, vector<16x32xf32>
    %c0_1 = arith.constant 0 : index
    %c0_2 = arith.constant 0 : index
    %1 = vector.load %arg2[%c0_1, %c0_2] : memref<32x128xf32, #tpu.memory_space<vmem>>, vector<32x128xf32>
    %cst = arith.constant dense<0.000000e+00> : vector<16x128xf32>
    %2 = tpu.matmul %0, %1, %cst {dimension_numbers = #tpu.dot_dimension_numbers<[1], [0], [0], [1], [0, 0, 1, 1], [], []>} : vector<16x32xf32>, vector<32x128xf32>, vector<16x128xf32> -> vector<16x128xf32>
    %c0_3 = arith.constant 0 : index
    %c0_4 = arith.constant 0 : index
    %3 = vector.load %arg3[%c0_3, %c0_4] : memref<1x128xf32, #tpu.memory_space<vmem>>, vector<1x128xf32>
    %4 = vector.broadcast %3 : vector<1x128xf32> to vector<16x128xf32>
    %5 = arith.addf %2, %4 : vector<16x128xf32>
    %cst_5 = arith.constant 5.000000e-01 : f32
    %6 = vector.broadcast %cst_5 : f32 to vector<16x128xf32>
    %7 = arith.mulf %6, %5 : vector<16x128xf32>
    %cst_6 = arith.constant 0.707106769 : f32
    %8 = vector.broadcast %cst_6 : f32 to vector<16x128xf32>
    %9 = arith.mulf %5, %8 : vector<16x128xf32>
    %10 = math.erf %9 : vector<16x128xf32>
    %cst_7 = arith.constant 1.000000e+00 : f32
    %11 = vector.broadcast %cst_7 : f32 to vector<16x128xf32>
    %12 = arith.addf %11, %10 : vector<16x128xf32>
    %13 = arith.mulf %7, %12 : vector<16x128xf32>
    %c0_8 = arith.constant 0 : index
    %c0_9 = arith.constant 0 : index
    %14 = vector.load %arg4[%c0_8, %c0_9] : memref<128x32xf32, #tpu.memory_space<vmem>>, vector<128x32xf32>
    %cst_10 = arith.constant dense<0.000000e+00> : vector<16x32xf32>
    %15 = tpu.matmul %13, %14, %cst_10 {dimension_numbers = #tpu.dot_dimension_numbers<[1], [0], [0], [1], [0, 0, 1, 1], [], []>} : vector<16x128xf32>, vector<128x32xf32>, vector<16x32xf32> -> vector<16x32xf32>
    %c0_11 = arith.constant 0 : index
    %c0_12 = arith.constant 0 : index
    %16 = vector.load %arg5[%c0_11, %c0_12] : memref<1x32xf32, #tpu.memory_space<vmem>>, vector<1x32xf32>
    %17 = vector.broadcast %16 : vector<1x32xf32> to vector<16x32xf32>
    %18 = arith.addf %15, %17 : vector<16x32xf32>
    %c0_13 = arith.constant 0 : index
    %c0_14 = arith.constant 0 : index
    %19 = vector.load %arg6[%c0_13, %c0_14] : memref<16x32xf32, #tpu.memory_space<vmem>>, vector<16x32xf32>
    tpu.vector_store %arg6[%c0_13, %c0_14], %18 {strides = array<i32>} : memref<16x32xf32, #tpu.memory_space<vmem>>, vector<16x32xf32>,
    return
  }
  func.func @transform_0(%arg0: i32) -> (i32, i32) {
    %c0_i32 = arith.constant 0 : i32
    %c0_i32_0 = arith.constant 0 : i32
    return %arg0, %c0_i32 : i32, i32
  }
  func.func @transform_1(%arg0: i32) -> (i32, i32) {
    %c0_i32 = arith.constant 0 : i32
    %c0_i32_0 = arith.constant 0 : i32
    %c0_i32_1 = arith.constant 0 : i32
    return %c0_i32, %c0_i32_0 : i32, i32
  }
  func.func @transform_2(%arg0: i32) -> (i32, i32) {
    %c0_i32 = arith.constant 0 : i32
    %c0_i32_0 = arith.constant 0 : i32
    %c0_i32_1 = arith.constant 0 : i32
    return %c0_i32, %c0_i32_0 : i32, i32
  }
  func.func @transform_3(%arg0: i32) -> (i32, i32) {
    %c0_i32 = arith.constant 0 : i32
    %c0_i32_0 = arith.constant 0 : i32
    %c0_i32_1 = arith.constant 0 : i32
    return %c0_i32, %c0_i32_0 : i32, i32
  }
  func.func @transform_4(%arg0: i32) -> (i32, i32) {
    %c0_i32 = arith.constant 0 : i32
    %c0_i32_0 = arith.constant 0 : i32
    %c0_i32_1 = arith.constant 0 : i32
    return %c0_i32, %c0_i32_0 : i32, i32
  }
  func.func @transform_5(%arg0: i32) -> (i32, i32) {
    %c0_i32 = arith.constant 0 : i32
    %c0_i32_0 = arith.constant 0 : i32
    return %arg0, %c0_i32 : i32, i32
  }
}

</mosaic_0001>

<bundles_post_ra>
// kernel: tpu_custom_call.1
= control target key start
LH: loop header
LB: loop body
LE: loop exit
PB: predicated region body
PF: predicated region fallthrough
CT: control target
= control target key end

     0   :  { %10 = vsyncpa [#allocation3], 0  ;;  %s708_s0 = inlined_call_operand.hbm [shape: f32[16,32], index: 0, kind: input, shape index: {}]   ;;  %s709_s1 = inlined_call_operand.hbm [shape: f32[32,128], index: 1, kind: input, shape index: {}]   ;;  %s710_s2 = inlined_call_operand.hbm [shape: f32[1,128], index: 2, kind: input, shape index: {}]   ;;  %s711_s3 = inlined_call_operand.hbm [shape: f32[128,32], index: 3, kind: input, shape index: {}]   ;;  %s712_s4 = inlined_call_operand.hbm [shape: f32[1,32], index: 4, kind: input, shape index: {}]   ;;  %s713_s5 = inlined_call_operand.hbm [shape: f32[16,32], index: 5, kind: output, shape index: {}]  }
   0x1   :  { %11 = vsyncpa [#allocation6], 0 }
   0x2   :  { %12 = vsyncpa [#allocation9], 0 }
   0x3   :  { %13 = vsyncpa [#allocation4], 0  ;;  %s575_s18 = smov [#allocation5]   ;;  %s576_s20 = smov [#allocation8]  }
   0x4   :  { %s31_s19 = sshll.u32 %s575_s18, 4  ;;  %s53_s21 = sshll.u32 %s576_s20, 4  ;;  %s32_s19 = int_to_ptr.vmem [resolvable:$true] %s31_s19  ;;  %s613_s21 = int_to_ptr.vmem [resolvable:$true] %s53_s21 }
   0x5   :  { %s435_s24 = scalar_lea.hbm %s709_s1, 512 }
   0x6   :  { %p436_p0 = scmp.ne.s32.totalorder %s709_s1, %s435_s24  ;;  %p439_p1 = scmp.lt.u32.totalorder %s435_s24, %s709_s1 }
   0x8   :  { %p441_p2 = pnand %p439_p1, %p436_p0 }
   0xa   :  { %444 = shalt.err (!%p441_p2)
}
   0xb   :  { %s445_s29 = scalar_lea.vmem %s32_s19, 512  ;;  %p450_p4 = scmp.lt.s32.totalorder %s32_s19, %s32_s19 }
   0xc   :  { %p446_p3 = scmp.ne.s32.totalorder %s32_s19, %s445_s29  ;;  %p451_p5 = scmp.lt.s32.totalorder %s445_s29, %s445_s29 }
   0xe   :  { %p452_p6 = por %p451_p5, %p450_p4 }
  0x10   :  { %p453_p7 = pnand %p452_p6, %p446_p3 }
  0x12   :  { %456 = shalt.err (!%p453_p7)
}
  0x13   :  { %s577_s30 = smov 128   ;;  %s578_s6 = smov 8  }
  0x14   :  { %37 = dma.hbm_to_vmem [thread:$0]  %s709_s1, 512, %s32_s19, [#allocation6], %s577_s30, %s577_s30, %s578_s6  }
  0x15   :  { %s457_s11 = scalar_lea.hbm %s711_s3, 2048 }
  0x16   :  { %p458_p8 = scmp.ne.s32.totalorder %s711_s3, %s457_s11  ;;  %p461_p9 = scmp.lt.u32.totalorder %s457_s11, %s711_s3 }
  0x18   :  { %p463_p10 = pnand %p461_p9, %p458_p8 }
  0x1a   :  { %466 = shalt.err (!%p463_p10)
}
  0x1b   :  { %s467_s16 = scalar_lea.vmem %s613_s21, 2048  ;;  %p472_p12 = scmp.lt.s32.totalorder %s613_s21, %s613_s21 }
  0x1c   :  { %p468_p11 = scmp.ne.s32.totalorder %s613_s21, %s467_s16  ;;  %p473_p13 = scmp.lt.s32.totalorder %s467_s16, %s467_s16 }
  0x1e   :  { %p474_p0 = por %p473_p13, %p472_p12 }
  0x20   :  { %p475_p1 = pnand %p474_p0, %p468_p11 }
  0x22   :  { %478 = shalt.err (!%p475_p1)
}
  0x23   :  { %59 = dma.hbm_to_vmem [thread:$0]  %s711_s3, 2048, %s613_s21, [#allocation9], %s577_s30, %s577_s30, %s578_s6  }
  0x24   :  { %s579_s18 = smov [#allocation2]   ;;  %s580_s20 = smov [#allocation7]  }
  0x25   :  { %s19_s19 = sshll.u32 %s579_s18, 4  ;;  %s44_s22 = sshll.u32 %s580_s20, 4  ;;  %s20_s19 = int_to_ptr.vmem [resolvable:$true] %s19_s19  ;;  %s45_s22 = int_to_ptr.vmem [resolvable:$true] %s44_s22 }
  0x26   :  { %s479_s25 = scalar_lea.hbm %s708_s0, 256 }
  0x27   :  { %p480_p2 = scmp.ne.s32.totalorder %s708_s0, %s479_s25  ;;  %p483_p3 = scmp.lt.u32.totalorder %s479_s25, %s708_s0 }
  0x29   :  { %p485_p4 = pnand %p483_p3, %p480_p2 }
  0x2b   :  { %488 = shalt.err (!%p485_p4)
}
  0x2c   :  { %s489_s3 = scalar_lea.vmem %s20_s19, 256  ;;  %p494_p6 = scmp.lt.s32.totalorder %s20_s19, %s20_s19 }
  0x2d   :  { %p490_p5 = scmp.ne.s32.totalorder %s20_s19, %s489_s3  ;;  %p495_p7 = scmp.lt.s32.totalorder %s489_s3, %s489_s3 }
  0x2f   :  { %p496_p8 = por %p495_p7, %p494_p6 }
  0x31   :  { %p497_p9 = pnand %p496_p8, %p490_p5 }
  0x33   :  { %500 = shalt.err (!%p497_p9)
}
  0x34   :  { %25 = dma.hbm_to_vmem [thread:$0]  %s708_s0, 256, %s20_s19, [#allocation3], %s577_s30, %s577_s30, %s578_s6  }
  0x35   :  { %s501_s10 = scalar_lea.hbm %s710_s2, 16 }
  0x36   :  { %p502_p10 = scmp.ne.s32.totalorder %s710_s2, %s501_s10  ;;  %p505_p11 = scmp.lt.u32.totalorder %s501_s10, %s710_s2 }
  0x38   :  { %p507_p12 = pnand %p505_p11, %p502_p10 }
  0x3a   :  { %510 = shalt.err (!%p507_p12)
}
  0x3b   :  { %s511_s15 = scalar_lea.vmem %s45_s22, 16  ;;  %s515_s16 = scalar_lea.vmem %s45_s22, 32 }
  0x3c   :  { %p512_p13 = scmp.ne.s32.totalorder %s45_s22, %s511_s15  ;;  %p516_p0 = scmp.lt.s32.totalorder %s45_s22, %s45_s22 }
  0x3d   :  { %p517_p1 = scmp.lt.s32.totalorder %s515_s16, %s511_s15 }
  0x3f   :  { %p518_p2 = por %p517_p1, %p516_p0 }
  0x41   :  { %p519_p3 = pnand %p518_p2, %p512_p13 }
  0x43   :  { %522 = shalt.err (!%p519_p3)
}
  0x44   :  { %47 = dma.hbm_to_vmem [thread:$0]  %s710_s2, 16, %s45_s22, [#allocation6]  }
  0x45   :  { %s581_s17 = smov [#allocation10]   ;;  %s523_s23 = scalar_lea.hbm %s712_s4, 16 }
  0x46   :  { %s66_s18 = sshll.u32 %s581_s17, 4  ;;  %p524_p4 = scmp.ne.s32.totalorder %s712_s4, %s523_s23  ;;  %s67_s18 = int_to_ptr.vmem [resolvable:$true] %s66_s18 }
  0x47   :  { %p527_p5 = scmp.lt.u32.totalorder %s523_s23, %s712_s4 }
  0x49   :  { %p529_p6 = pnand %p527_p5, %p524_p4 }
  0x4b   :  { %532 = shalt.err (!%p529_p6)
}
  0x4c   :  { %s533_s28 = scalar_lea.vmem %s67_s18, 16  ;;  %s537_s2 = scalar_lea.vmem %s67_s18, 32 }
  0x4d   :  { %p534_p7 = scmp.ne.s32.totalorder %s67_s18, %s533_s28  ;;  %p538_p8 = scmp.lt.s32.totalorder %s67_s18, %s67_s18 }
  0x4e   :  { %p539_p9 = scmp.lt.s32.totalorder %s537_s2, %s533_s28 }
  0x50   :  { %p540_p10 = por %p539_p9, %p538_p8 }
  0x52   :  { %p541_p11 = pnand %p540_p10, %p534_p7 }
  0x54   :  { %544 = shalt.err (!%p541_p11)
}
  0x55   :  { %69 = dma.hbm_to_vmem [thread:$0]  %s712_s4, 16, %s67_s18, [#allocation9]  }
  0x56   :  { %567 = dma.done.wait [#allocation3], 256  }
  0x57   :  { %568 = vsyncadd [#allocation3], 4294967040 }
  0x58   :  { %569 = dma.done.wait [#allocation6], 528  }
  0x59   :  { %570 = vsyncadd [#allocation6], 4294966768 }
  0x5a   :  { %571 = dma.done.wait [#allocation9], 2064  }
  0x5b   :  { %572 = vsyncadd [#allocation9], 4294965232  ;;  %vm98_vm0 = vcmask 261120   ;;  %v87_v0 = vld [vmem:[#allocation5] sm:$0xff]  ;;  %v88_v1 = vld [vmem:[#allocation5 + $0x8] sm:$0xff]  ;;  %s582_s4 = smov [#allocation11]  }
  0x5c   :  { %v89_v2 = vld [vmem:[#allocation5 + $0x10] sm:$0xff]  ;;  %v383_v3 = vpack.c.bf16 %v88_v1, %v87_v0  ;;  %v90_v4 = vld [vmem:[#allocation5 + $0x18] sm:$0xff]  ;;  %v190_v7 = vld [vmem:[#allocation8] sm:$0xff]  ;;  %s295_s3 = sshll.u32 %s582_s4, 4  ;;  %s296_s3 = int_to_ptr.vmem [resolvable:$true] %s295_s3 }
  0x5d   :  { %v85_v5 = vld [vmem:[#allocation2] sm:$0xff]  ;;  %v387_v6 = vpack.c.bf16 %v90_v4, %v89_v2  ;;  %v193_v11 = vld [vmem:[#allocation8 + $0x18] sm:$0xff]  ;;  %v194_v13 = vld [vmem:[#allocation8 + $0x20] sm:$0xff]  ;;  %s545_s21 = scalar_lea.vmem %s296_s3, 256  ;;  %p550_p13 = scmp.lt.s32.totalorder %s296_s3, %s296_s3 }
  0x5e   :  { %345 = vmatprep.mubr.msk.f32.mxu0 %vm98_vm0, %v85_v5  ;;  %v191_v8 = vld [vmem:[#allocation8 + $0x8] sm:$0xff]  ;;  %v192_v9 = vld [vmem:[#allocation8 + $0x10] sm:$0xff]  ;;  %384 = vmatprep.subr.bf16.mxu0 %v383_v3  ;;  %v197_v18 = vld [vmem:[#allocation8 + $0x38] sm:$0xff]  ;;  %p546_p12 = scmp.ne.s32.totalorder %s296_s3, %s545_s21  ;;  %p551_p0 = scmp.lt.s32.totalorder %s545_s21, %s545_s21 }
  0x5f   :  { %v391_v10 = vpack.c.bf16 %v191_v8, %v190_v7  ;;  %386 = vmatpush3.bf16.msra.mxu0 %v383_v3  ;;  %v395_v12 = vpack.c.bf16 %v193_v11, %v192_v9  ;;  %v195_v14 = vld [vmem:[#allocation8 + $0x28] sm:$0xff]  ;;  %v86_v16 = vld [vmem:[#allocation2 + $0x8] sm:$0xff]  ;;  %v198_v20 = vld [vmem:[#allocation8 + $0x40] sm:$0xff] }
  0x60   :  { %388 = vmatprep.subr.bf16.mxu0 %v387_v6  ;;  %v399_v15 = vpack.c.bf16 %v195_v14, %v194_v13  ;;  %v196_v17 = vld [vmem:[#allocation8 + $0x30] sm:$0xff]  ;;  %v199_v21 = vld [vmem:[#allocation8 + $0x48] sm:$0xff]  ;;  %v201_v24 = vld [vmem:[#allocation8 + $0x58] sm:$0xff]  ;;  %p552_p1 = por %p551_p0, %p550_p13 }
  0x61   :  { %392 = vmatprep.subr.bf16.mxu1 %v391_v10  ;;  %v403_v19 = vpack.c.bf16 %v197_v18, %v196_v17  ;;  %v407_v22 = vpack.c.bf16 %v199_v21, %v198_v20  ;;  %v200_v23 = vld [vmem:[#allocation8 + $0x50] sm:$0xff]  ;;  %v202_v26 = vld [vmem:[#allocation8 + $0x60] sm:$0xff]  ;;  %v203_v27 = vld [vmem:[#allocation8 + $0x68] sm:$0xff] }
  0x62   :  { %394 = vmatpush3.bf16.msra.mxu1 %v391_v10  ;;  %v411_v25 = vpack.c.bf16 %v201_v24, %v200_v23  ;;  %v415_v28 = vpack.c.bf16 %v203_v27, %v202_v26  ;;  %v204_v29 = vld [vmem:[#allocation8 + $0x70] sm:$0xff]  ;;  %v205_v30 = vld [vmem:[#allocation8 + $0x78] sm:$0xff]  ;;  %v312_v47 = vld [vmem:[#allocation10] ss:$0 sm:$0xff]  ;;  %p553_p2 = pnand %p552_p1, %p546_p12 }
  0x63   :  { %396 = vmatprep.subr.bf16.mxu1 %v395_v12  ;;  %390 = vmatpush3.bf16.msra.mxu0 %v387_v6  ;;  %v419_v31 = vpack.c.bf16 %v205_v30, %v204_v29  ;;  %v309_v32 = vld [vmem:[#allocation7] ss:$0 sm:$0xff] }
  0x66   :  { %398 = vmatpush3.bf16.msra.mxu1 %v395_v12  ;;  %346 = vmatmul.mubr.msk.f32.vlgmr.msra.gmra.mrb[0].mxu0 %vm98_vm0, %v86_v16 }
  0x67   :  { %400 = vmatprep.subr.bf16.mxu1 %v399_v15 }
  0x6a   :  { %402 = vmatpush3.bf16.msra.mxu1 %v399_v15 }
  0x6b   :  { %404 = vmatprep.subr.bf16.mxu1 %v403_v19 }
  0x6e   :  { %406 = vmatpush3.bf16.msra.mxu1 %v403_v19 }
  0x6f   :  { %408 = vmatprep.subr.bf16.mxu1 %v407_v22 }
  0x72   :  { %410 = vmatpush3.bf16.msra.mxu1 %v407_v22 }
  0x73   :  { %412 = vmatprep.subr.bf16.mxu1 %v411_v25 }
  0x76   :  { %414 = vmatpush3.bf16.msra.mxu1 %v411_v25 }
  0x77   :  { %416 = vmatprep.subr.bf16.mxu1 %v415_v28 }
  0x7a   :  { %418 = vmatpush3.bf16.msra.mxu1 %v415_v28 }
  0x7b   :  { %420 = vmatprep.subr.bf16.mxu1 %v419_v31 }
  0x7e   :  { %422 = vmatpush3.bf16.msra.mxu1 %v419_v31 }
 0x139   :  { %v347_v33 = vpop.f32.mrb[0].mxu0 }
 0x13a   :  { %v177_v34 = vadd.f32 %v347_v33, %v309_v32  ;;  %v171_v35 = vpop.f32.mrb[1].mxu0 }
 0x13b   :  { %v172_v36 = vadd.f32 %v309_v32, %v171_v35 }
 0x13c   :  { %v183_v37 = vmul.f32 0.70710677, %v177_v34  ;;  %v181_v44 = vmul.f32 0.5, %v177_v34 }
 0x13d   :  { %v182_v38 = vmul.f32 0.70710677, %v172_v36  ;;  %v180_v42 = vmul.f32 0.5, %v172_v36 }
 0x13e   :  { %431 = verf.f32 %v183_v37 }
 0x13f   :  { %433 = verf.f32 %v182_v38 }
 0x148   :  { %v432_v39 = vpop.eup %431 }
 0x149   :  { %v434_v40 = vpop.eup %433  ;;  %v187_v41 = vadd.f32 1.0, %v432_v39 }
 0x14a   :  { %v186_v43 = vadd.f32 1.0, %v434_v40 }
 0x14b   :  { %v189_v46 = vmul.f32 %v187_v41, %v181_v44 }
 0x14c   :  { %v188_v45 = vmul.f32 %v186_v43, %v180_v42 }
 0x14e   :  { %380 = vmatprep.mubr.f32.mxu1 %v188_v45 }
 0x14f   :  { %381 = vmatmul.mubr.f32.vlgmr.msra.gmra.mrb[0].mxu1 %v189_v46 }
 0x222   :  { %v382_v48 = vpop.f32.mrb[0].mxu1 }
 0x223   :  { %v285_v49 = vadd.f32 %v382_v48, %v312_v47  ;;  %v279_v50 = vpop.f32.mrb[1].mxu1 }
 0x224   :  { %v280_v51 = vadd.f32 %v312_v47, %v279_v50 }
 0x225   :  { %289 = vst.msk [vmem:[#allocation11 + $0x8] sm:$0xff] %vm98_vm0, %v285_v49 }
 0x226   :  { %288 = vst.msk [vmem:[#allocation11] sm:$0xff] %vm98_vm0, %v280_v51 }
 0x227   :  { %556 = shalt.err (!%p553_p2)
}
 0x228   :  { %s557_s9 = scalar_lea.hbm %s713_s5, 256 }
 0x229   :  { %p558_p3 = scmp.ne.s32.totalorder %s713_s5, %s557_s9  ;;  %p561_p4 = scmp.lt.u32.totalorder %s557_s9, %s713_s5 }
 0x22b   :  { %p563_p5 = pnand %p561_p4, %p558_p3 }
 0x22d   :  { %566 = shalt.err (!%p563_p5)
}
 0x22e   :  { %301 = dma.vmem_to_hbm [thread:$0]  %s296_s3, 256, %s713_s5, [#allocation4], %s577_s30, %s577_s30, %s578_s6  }
 0x22f   :  { %573 = dma.done.wait [#allocation4], 256  }
 0x230   :  { %574 = vsyncadd [#allocation4], 4294967040 }
 0x231   :  { %305 = vsyncpa [#allocation3], 1 }
 0x232   :  { %306 = vsyncpa [#allocation6], 1 }
 0x233   :  { %307 = vsyncpa [#allocation9], 1 }
 0x234   :  { %308 = vsyncpa [#allocation4], 1 }

</bundles_post_ra>
